<compile_context>
chip_gen: v6e
topology: v6e:2x2x1
jax: 0.10.0
libtpu: 0.0.40
codegen_flags: <defaults>
</compile_context>

<pallas_src>
import functools

import jax
import jax.numpy as jnp
import numpy as np
from jax.experimental import pallas as pl
from jax.experimental.pallas import tpu as pltpu


def _stencil_conv_bn_relu_kernel(x_ref, w_ref, g_ref, b_ref, m_ref, o_ref, *,
                                 N, H, Wp, Cin, Cout, inv_count, eps):
    """Fused 3x3 conv (padding=1) + BatchNorm (batch stats) + ReLU.

    x_ref: (N, Cin, (H+3)*Wp) zero-padded NCHW input, spatial dims flattened
    w_ref: (Cout, 3*Cin)      stacked weights [w1 | w2 | w3 - 2*w1 - 2*w2]
    g_ref, b_ref: (Cout, 1)   BN gamma / beta
    m_ref: (1, 1, L)          1.0 at real strided output positions, else 0.0
    o_ref: (N, Cout, L)       stride-1 output grid on the padded width Wp
    """
    L = H * Wp

    def tap(off):
        # flattened tap x_pad[h + l, w + m] for all stride-1 positions (h, w):
        # off = l * Wp + m.  Static lane-offset loads from VMEM.
        return x_ref[:, :, off:off + L]

    c = tap(Wp + 1)                      # centre tap (1, 1)
    sv = tap(1) + tap(2 * Wp + 1)        # vertical neighbours (top + bottom)
    sh = tap(Wp) + tap(Wp + 2)           # horizontal neighbours (left + right)

    # (N, 3*Cin, L): stencil-major / channel-minor, matching the stacked weights.
    s = jnp.concatenate([sv, sh, c], axis=1)

    # One batched MXU matmul: (N, Cout, 3*Cin) x (N, 3*Cin, L) -> (N, Cout, L).
    wb = jnp.broadcast_to(w_ref[...], (N, Cout, 3 * Cin))
    conv = jnp.einsum('noc,ncl->nol', wb, s,
                      preferred_element_type=jnp.float32)

    # --- BatchNorm2d (training mode: batch mean, biased variance) ------------
    # Only the real (strided, non-junk) output positions contribute to stats.
    mask = m_ref[...]                                      # (1, 1, L)
    row_sum = jnp.sum(conv * mask, axis=2, keepdims=True)  # lanes first
    mean = jnp.sum(row_sum, axis=0, keepdims=True) * inv_count   # (1, Cout, 1)
    d = conv - mean
    dm = d * mask
    row_sq = jnp.sum(dm * dm, axis=2, keepdims=True)
    var = jnp.sum(row_sq, axis=0, keepdims=True) * inv_count     # (1, Cout, 1)

    scale = g_ref[...][None] * jax.lax.rsqrt(var + eps)           # (1, Cout, 1)
    y = d * scale + b_ref[...][None]

    # --- ReLU + lane-dense store ---------------------------------------------
    o_ref[...] = jnp.maximum(y, 0.0)


def my_layer_forward(x_nchw, w1, w2, w3, gamma, beta, *, stride=1, eps=1e-5):
    """JAX wrapper reproducing my_layer.forward. x_nchw: (N, Cin, H, W)."""
    N, Cin, H, W = x_nchw.shape
    Cout = w1.shape[0]
    Wp = W + 2                      # padded width (left 1, right 1)
    L = H * Wp                      # stride-1 output grid, laid out on Wp
    Ho = (H - 1) // stride + 1
    Wo = (W - 1) // stride + 1

    # Stacked pointwise weights.  The fixed stencils are folded so the kernel
    # only needs neighbour sums:  conv = w1@(top+bot) + w2@(l+r) + w3'@centre
    # with w3' = w3 - 2*w1 - 2*w2.
    w1m = w1[:, :, 0].astype(jnp.float32)
    w2m = w2[:, :, 0].astype(jnp.float32)
    w3m = w3[:, :, 0].astype(jnp.float32)
    w_stack = jnp.concatenate([w1m, w2m, w3m - 2.0 * w1m - 2.0 * w2m], axis=1)

    # NCHW zero padding: 1 pixel all around plus two extra bottom rows so every
    # flattened tap slice of length H*Wp stays in bounds.  No layout transposes.
    x_pad = jnp.pad(x_nchw.astype(jnp.float32),
                    ((0, 0), (0, 0), (1, 2), (1, 1)))
    x_flat = x_pad.reshape(N, Cin, (H + 3) * Wp)

    # Static 0/1 mask of real strided output positions on the (H, Wp) grid.
    m2 = np.zeros((H, Wp), np.float32)
    m2[::stride, 0:W:stride] = 1.0
    mask = jnp.asarray(m2.reshape(1, 1, L))
    inv_count = 1.0 / float(N * Ho * Wo)

    gamma2 = gamma.reshape(Cout, 1).astype(jnp.float32)
    beta2 = beta.reshape(Cout, 1).astype(jnp.float32)

    kernel = functools.partial(_stencil_conv_bn_relu_kernel,
                               N=N, H=H, Wp=Wp, Cin=Cin, Cout=Cout,
                               inv_count=inv_count, eps=eps)

    out_flat = pl.pallas_call(
        kernel,
        out_shape=jax.ShapeDtypeStruct((N, Cout, L), jnp.float32),
        grid=(1,),
        in_specs=[
            pl.BlockSpec((N, Cin, (H + 3) * Wp), lambda i: (0, 0, 0)),
            pl.BlockSpec((Cout, 3 * Cin), lambda i: (0, 0)),
            pl.BlockSpec((Cout, 1), lambda i: (0, 0)),
            pl.BlockSpec((Cout, 1), lambda i: (0, 0)),
            pl.BlockSpec((1, 1, L), lambda i: (0, 0, 0)),
        ],
        out_specs=pl.BlockSpec((N, Cout, L), lambda i: (0, 0, 0)),
        compiler_params=pltpu.CompilerParams(
            dimension_semantics=("arbitrary",)),
    )(x_flat, w_stack, gamma2, beta2, mask)

    # (N, Cout, H, Wp) stride-1 grid -> keep only the real strided outputs.
    # Already NCHW: no output transpose.
    out = out_flat.reshape(N, Cout, H, Wp)[:, :, ::stride, 0:W:stride]
    return out


def _reference(x_nchw, w1, w2, w3, gamma, beta, *, stride=1, eps=1e-5):
    """Pure-JAX reference (lax conv + BN + ReLU) for a correctness check."""
    f1 = jnp.array([[0., 1., 0.], [0., -2., 0.], [0., 1., 0.]], jnp.float32)
    f2 = jnp.array([[0., 0., 0.], [1., -2., 1.], [0., 0., 0.]], jnp.float32)
    f3 = jnp.array([[0., 0., 0.], [0., 1., 0.], [0., 0., 0.]], jnp.float32)
    k = (jnp.einsum('oik,lm->oilm', w1, f1)
         + jnp.einsum('oik,lm->oilm', w2, f2)
         + jnp.einsum('oik,lm->oilm', w3, f3))
    y = jax.lax.conv_general_dilated(
        x_nchw.astype(jnp.float32), k, (stride, stride), ((1, 1), (1, 1)),
        dimension_numbers=('NCHW', 'OIHW', 'NCHW'))
    mean = jnp.mean(y, axis=(0, 2, 3), keepdims=True)
    var = jnp.mean((y - mean) ** 2, axis=(0, 2, 3), keepdims=True)
    y = (y - mean) * jax.lax.rsqrt(var + eps)
    y = y * gamma.reshape(1, -1, 1, 1) + beta.reshape(1, -1, 1, 1)
    return jnp.maximum(y, 0.0)


if __name__ == "__main__":
    # Small shapes consistent with the module: N=2, Cin=4, Cout=8, 16x16 spatial.
    N, Cin, Cout, H, W = 2, 4, 8, 16, 16

    key = jax.random.PRNGKey(0)
    kx, k1, k2, k3 = jax.random.split(key, 4)
    x = jax.random.normal(kx, (N, Cin, H, W), jnp.float32)

    # xavier_normal_ on (Cout, Cin, 1): std = sqrt(2 / (fan_in + fan_out)).
    std = float(np.sqrt(2.0 / (Cin + Cout)))
    w1 = std * jax.random.normal(k1, (Cout, Cin, 1), jnp.float32)
    w2 = std * jax.random.normal(k2, (Cout, Cin, 1), jnp.float32)
    w3 = std * jax.random.normal(k3, (Cout, Cin, 1), jnp.float32)

    gamma = jnp.ones((Cout,), jnp.float32)   # BatchNorm2d default weight
    beta = jnp.zeros((Cout,), jnp.float32)   # BatchNorm2d default bias

    for stride in (1, 2):
        out = my_layer_forward(x, w1, w2, w3, gamma, beta, stride=stride)
        out = jax.block_until_ready(out)
        ref = _reference(x, w1, w2, w3, gamma, beta, stride=stride)
        np.testing.assert_allclose(np.asarray(out), np.asarray(ref),
                                   rtol=2e-4, atol=2e-4)

    print("KERNEL_OK")
</pallas_src>

<mosaic_0001>
module attributes {stable_mosaic.version = 11 : i64} {
  func.func @_stencil_conv_bn_relu_kernel(%arg0: i32, %arg1: memref<2x4x342xf32, #tpu.memory_space<vmem>>, %arg2: memref<8x12xf32, #tpu.memory_space<vmem>>, %arg3: memref<8x1xf32, #tpu.memory_space<vmem>>, %arg4: memref<8x1xf32, #tpu.memory_space<vmem>>, %arg5: memref<1x1x288xf32, #tpu.memory_space<vmem>>, %arg6: memref<2x8x288xf32, #tpu.memory_space<vmem>>) attributes {dimension_semantics = [#tpu.dimension_semantics<arbitrary>], iteration_bounds = array<i64: 1>, scalar_prefetch = 0 : i64, scratch_operands = 0 : i64, tpu.core_type = #tpu.core_type<tc>, window_params = [{pipeline_mode = #tpu.pipeline_mode<synchronous>, transform_indices = @transform_0, window_bounds = array<i64: 2, 4, 342>}, {pipeline_mode = #tpu.pipeline_mode<synchronous>, transform_indices = @transform_1, window_bounds = array<i64: 8, 12>}, {pipeline_mode = #tpu.pipeline_mode<synchronous>, transform_indices = @transform_2, window_bounds = array<i64: 8, 1>}, {pipeline_mode = #tpu.pipeline_mode<synchronous>, transform_indices = @transform_3, window_bounds = array<i64: 8, 1>}, {pipeline_mode = #tpu.pipeline_mode<synchronous>, transform_indices = @transform_4, window_bounds = array<i64: 1, 1, 288>}, {pipeline_mode = #tpu.pipeline_mode<synchronous>, transform_indices = @transform_5, window_bounds = array<i64: 2, 8, 288>}]} {
    %c0 = arith.constant 0 : index
    %c0_0 = arith.constant 0 : index
    %c19 = arith.constant 19 : index
    %0 = vector.load %arg1[%c0, %c0_0, %c19] : memref<2x4x342xf32, #tpu.memory_space<vmem>>, vector<2x4x288xf32>
    %c0_1 = arith.constant 0 : index
    %c0_2 = arith.constant 0 : index
    %c1 = arith.constant 1 : index
    %1 = vector.load %arg1[%c0_1, %c0_2, %c1] : memref<2x4x342xf32, #tpu.memory_space<vmem>>, vector<2x4x288xf32>
    %c0_3 = arith.constant 0 : index
    %c0_4 = arith.constant 0 : index
    %c37 = arith.constant 37 : index
    %2 = vector.load %arg1[%c0_3, %c0_4, %c37] : memref<2x4x342xf32, #tpu.memory_space<vmem>>, vector<2x4x288xf32>
    %3 = arith.addf %1, %2 : vector<2x4x288xf32>
    %c0_5 = arith.constant 0 : index
    %c0_6 = arith.constant 0 : index
    %c18 = arith.constant 18 : index
    %4 = vector.load %arg1[%c0_5, %c0_6, %c18] : memref<2x4x342xf32, #tpu.memory_space<vmem>>, vector<2x4x288xf32>
    %c0_7 = arith.constant 0 : index
    %c0_8 = arith.constant 0 : index
    %c20 = arith.constant 20 : index
    %5 = vector.load %arg1[%c0_7, %c0_8, %c20] : memref<2x4x342xf32, #tpu.memory_space<vmem>>, vector<2x4x288xf32>
    %6 = arith.addf %4, %5 : vector<2x4x288xf32>
    %7 = tpu.concatenate %3, %6, %0 in 1 : vector<2x4x288xf32>, vector<2x4x288xf32>, vector<2x4x288xf32> -> vector<2x12x288xf32>
    %c0_9 = arith.constant 0 : index
    %c0_10 = arith.constant 0 : index
    %8 = vector.load %arg2[%c0_9, %c0_10] : memref<8x12xf32, #tpu.memory_space<vmem>>, vector<8x12xf32>
    %9 = vector.shape_cast %8 : vector<8x12xf32> to vector<1x8x12xf32>
    %10 = vector.broadcast %9 : vector<1x8x12xf32> to vector<2x8x12xf32>
    "tpu.trace_start"() <{level = 10 : i32, message = "noc,ncl->nol"}> : () -> ()
    %cst = arith.constant dense<0.000000e+00> : vector<2x8x288xf32>
    %11 = tpu.matmul %10, %7, %cst {dimension_numbers = #tpu.dot_dimension_numbers<[2], [1], [1], [2], [0, 0, 0, 1, 1, 2], [0], [0]>} : vector<2x8x12xf32>, vector<2x12x288xf32>, vector<2x8x288xf32> -> vector<2x8x288xf32>
    "tpu.trace_stop"() : () -> ()
    %c0_11 = arith.constant 0 : index
    %c0_12 = arith.constant 0 : index
    %c0_13 = arith.constant 0 : index
    %12 = vector.load %arg5[%c0_11, %c0_12, %c0_13] : memref<1x1x288xf32, #tpu.memory_space<vmem>>, vector<1x1x288xf32>
    %13 = vector.broadcast %12 : vector<1x1x288xf32> to vector<2x8x288xf32>
    %14 = arith.mulf %11, %13 : vector<2x8x288xf32>
    %cst_14 = arith.constant dense<0.000000e+00> : vector<2x8xf32>
    %15 = vector.multi_reduction <add>, %14, %cst_14 [2] : vector<2x8x288xf32> to vector<2x8xf32>
    %16 = vector.shape_cast %15 : vector<2x8xf32> to vector<2x8x1xf32>
    %cst_15 = arith.constant dense<0.000000e+00> : vector<8x1xf32>
    %17 = vector.multi_reduction <add>, %16, %cst_15 [0] : vector<2x8x1xf32> to vector<8x1xf32>
    %18 = vector.shape_cast %17 : vector<8x1xf32> to vector<1x8x1xf32>
    %cst_16 = arith.constant 0.001953125 : f32
    %19 = vector.broadcast %cst_16 : f32 to vector<1x8x1xf32>
    %20 = arith.mulf %18, %19 : vector<1x8x1xf32>
    %21 = vector.broadcast %20 : vector<1x8x1xf32> to vector<2x8x288xf32>
    %22 = arith.subf %11, %21 : vector<2x8x288xf32>
    %23 = vector.broadcast %12 : vector<1x1x288xf32> to vector<2x8x288xf32>
    %24 = arith.mulf %22, %23 : vector<2x8x288xf32>
    %25 = arith.mulf %24, %24 : vector<2x8x288xf32>
    %cst_17 = arith.constant dense<0.000000e+00> : vector<2x8xf32>
    %26 = vector.multi_reduction <add>, %25, %cst_17 [2] : vector<2x8x288xf32> to vector<2x8xf32>
    %27 = vector.shape_cast %26 : vector<2x8xf32> to vector<2x8x1xf32>
    %cst_18 = arith.constant dense<0.000000e+00> : vector<8x1xf32>
    %28 = vector.multi_reduction <add>, %27, %cst_18 [0] : vector<2x8x1xf32> to vector<8x1xf32>
    %29 = vector.shape_cast %28 : vector<8x1xf32> to vector<1x8x1xf32>
    %cst_19 = arith.constant 0.001953125 : f32
    %30 = vector.broadcast %cst_19 : f32 to vector<1x8x1xf32>
    %31 = arith.mulf %29, %30 : vector<1x8x1xf32>
    %c0_20 = arith.constant 0 : index
    %c0_21 = arith.constant 0 : index
    %32 = vector.load %arg3[%c0_20, %c0_21] : memref<8x1xf32, #tpu.memory_space<vmem>>, vector<8x1xf32>
    %33 = vector.shape_cast %32 : vector<8x1xf32> to vector<1x8x1xf32>
    %cst_22 = arith.constant 9.99999974E-6 : f32
    %34 = vector.broadcast %cst_22 : f32 to vector<1x8x1xf32>
    %35 = arith.addf %31, %34 : vector<1x8x1xf32>
    %36 = math.rsqrt %35 : vector<1x8x1xf32>
    %37 = arith.mulf %33, %36 : vector<1x8x1xf32>
    %38 = vector.broadcast %37 : vector<1x8x1xf32> to vector<2x8x288xf32>
    %39 = arith.mulf %22, %38 : vector<2x8x288xf32>
    %c0_23 = arith.constant 0 : index
    %c0_24 = arith.constant 0 : index
    %40 = vector.load %arg4[%c0_23, %c0_24] : memref<8x1xf32, #tpu.memory_space<vmem>>, vector<8x1xf32>
    %41 = vector.shape_cast %40 : vector<8x1xf32> to vector<1x8x1xf32>
    %42 = vector.broadcast %41 : vector<1x8x1xf32> to vector<2x8x288xf32>
    %43 = arith.addf %39, %42 : vector<2x8x288xf32>
    %cst_25 = arith.constant 0.000000e+00 : f32
    %44 = vector.broadcast %cst_25 : f32 to vector<2x8x288xf32>
    %45 = arith.maximumf %43, %44 : vector<2x8x288xf32>
    %c0_26 = arith.constant 0 : index
    %c0_27 = arith.constant 0 : index
    %c0_28 = arith.constant 0 : index
    %46 = vector.load %arg6[%c0_26, %c0_27, %c0_28] : memref<2x8x288xf32, #tpu.memory_space<vmem>>, vector<2x8x288xf32>
    tpu.vector_store %arg6[%c0_26, %c0_27, %c0_28], %45 {strides = array<i32>} : memref<2x8x288xf32, #tpu.memory_space<vmem>>, vector<2x8x288xf32>,
    return
  }
  func.func @transform_0(%arg0: i32) -> (i32, i32, i32) {
    %c0_i32 = arith.constant 0 : i32
    %c0_i32_0 = arith.constant 0 : i32
    %c0_i32_1 = arith.constant 0 : i32
    %c0_i32_2 = arith.constant 0 : i32
    return %c0_i32, %c0_i32_0, %c0_i32_1 : i32, i32, i32
  }
  func.func @transform_1(%arg0: i32) -> (i32, i32) {
    %c0_i32 = arith.constant 0 : i32
    %c0_i32_0 = arith.constant 0 : i32
    %c0_i32_1 = arith.constant 0 : i32
    return %c0_i32, %c0_i32_0 : i32, i32
  }
  func.func @transform_2(%arg0: i32) -> (i32, i32) {
    %c0_i32 = arith.constant 0 : i32
    %c0_i32_0 = arith.constant 0 : i32
    %c0_i32_1 = arith.constant 0 : i32
    return %c0_i32, %c0_i32_0 : i32, i32
  }
  func.func @transform_3(%arg0: i32) -> (i32, i32) {
    %c0_i32 = arith.constant 0 : i32
    %c0_i32_0 = arith.constant 0 : i32
    %c0_i32_1 = arith.constant 0 : i32
    return %c0_i32, %c0_i32_0 : i32, i32
  }
  func.func @transform_4(%arg0: i32) -> (i32, i32, i32) {
    %c0_i32 = arith.constant 0 : i32
    %c0_i32_0 = arith.constant 0 : i32
    %c0_i32_1 = arith.constant 0 : i32
    %c0_i32_2 = arith.constant 0 : i32
    return %c0_i32, %c0_i32_0, %c0_i32_1 : i32, i32, i32
  }
  func.func @transform_5(%arg0: i32) -> (i32, i32, i32) {
    %c0_i32 = arith.constant 0 : i32
    %c0_i32_0 = arith.constant 0 : i32
    %c0_i32_1 = arith.constant 0 : i32
    %c0_i32_2 = arith.constant 0 : i32
    return %c0_i32, %c0_i32_0, %c0_i32_1 : i32, i32, i32
  }
}

</mosaic_0001>

<bundles_post_ra>
// kernel: tpu_custom_call.1
= control target key start
LH: loop header
LB: loop body
LE: loop exit
PB: predicated region body
PF: predicated region fallthrough
CT: control target
= control target key end

     0   :  { %10 = vsyncpa [#allocation3], 0  ;;  %s890_s0 = inlined_call_operand.hbm [shape: f32[2,4,342], index: 0, kind: input, shape index: {}]   ;;  %s891_s1 = inlined_call_operand.vmem [shape: f32[8,12], index: 1, kind: input, shape index: {}]   ;;  %s892_s2 = inlined_call_operand.vmem [shape: f32[8,1], index: 2, kind: input, shape index: {}]   ;;  %s893_s3 = inlined_call_operand.vmem [shape: f32[8,1], index: 3, kind: input, shape index: {}]   ;;  %s894_s4 = inlined_call_operand.vmem [shape: f32[1,1,288], index: 4, kind: input, shape index: {}]   ;;  %s895_s5 = inlined_call_operand.hbm [shape: f32[2,8,288], index: 5, kind: output, shape index: {}]  }
   0x1   :  { %11 = vsyncpa [#allocation4], 0  ;;  %s716_s18 = smov [#allocation2]  }
   0x2   :  { %s17_s19 = sshll.u32 %s716_s18, 4  ;;  %s18_s19 = int_to_ptr.vmem [resolvable:$true] %s17_s19 }
   0x3   :  { %s680_s20 = scalar_lea.vmem %s18_s19, 384  ;;  %p685_p1 = scmp.lt.s32.totalorder %s18_s19, %s18_s19 }
   0x4   :  { %p681_p0 = scmp.ne.s32.totalorder %s18_s19, %s680_s20  ;;  %p686_p2 = scmp.lt.s32.totalorder %s680_s20, %s680_s20 }
   0x6   :  { %p687_p3 = por %p686_p2, %p685_p1 }
   0x8   :  { %p688_p4 = pnand %p687_p3, %p681_p0 }
   0xa   :  { %691 = shalt.err (!%p688_p4)
}
   0xb   :  { %s717_s21 = smov 192   ;;  %s718_s22 = smov 12  }
   0xc   :  { %23 = dma.hbm_to_vmem [thread:$0]  %s890_s0, 384, %s18_s19, [#allocation3], %s717_s21, %s717_s21, %s718_s22  }
   0xd   :  { %712 = dma.done.wait [#allocation3], 384  }
   0xe   :  { %713 = vsyncadd [#allocation3], 4294966912  ;;  %v763_v0 = vld [vmem:[#allocation2 + $0xc] sm:$0xff]  ;;  %v765_v1 = vld [vmem:[#allocation2] sm:$0xff]  ;;  %s719_s25 = smov 126   ;;  %s720_s0 = smov 92  }
   0xf   :  { %73 = vrot.lane.b32.xlu1 %v763_v0, %s719_s25  ;;  %69 = vrot.lane.b32.xlu0 %v765_v1, %s719_s25  ;;  %v769_v2 = vld [vmem:[#allocation2 + $0x14] sm:$0xf]  ;;  %v771_v3 = vld [vmem:[#allocation2 + $0x8] sm:$0xf]  ;;  %v131_v4 = vcombine.high %v765_v1, %v765_v1  ;;  %s721_s26 = smov 110   ;;  %v132_v5 = vcombine.high %v763_v0, %v763_v0  ;;  %vm55_vm0 = vcmask 1043456  }
  0x10   :  { %vm82_vm1 = vcmask 1031168   ;;  %s722_s27 = smov 111   ;;  %vm57_vm2 = vcmask 752640   ;;  %v723_v38 = vmov 0.0   ;;  %vm145_vm3 = vcmask 900096   ;;  %s724_s28 = smov 127  }
  0x11   :  { %638 = vmatprep.subr.mxu1 %v723_v38  ;;  %254 = vmatprep.mubr.f32.mxu0 %v723_v38  ;;  %vm120_vm4 = vcmask 908288   ;;  %vm725_vm5 = vmmov 0   ;;  %vm172_vm6 = vcmask 1039360   ;;  %vm180_vm7 = vcmask 97280  }
  0x12   :  { %642 = vmatprep.mubr.msk.f32.mxu1 %vm725_vm5, %v723_v38  ;;  %vm524_vm8 = vcmask 261120  }
  0x13   :  { %75 = vrot.lane.b32.xlu1 %v769_v2, %s719_s25  ;;  %71 = vrot.lane.b32.xlu0 %v771_v3, %s719_s25 }
  0x17   :  { %45 = vrot.lane.b32.xlu1 %v771_v3, %s720_s0  ;;  %43 = vrot.lane.b32.xlu0 %v765_v1, %s720_s0 }
  0x1b   :  { %49 = vrot.lane.b32.xlu1 %v769_v2, %s720_s0  ;;  %47 = vrot.lane.b32.xlu0 %v763_v0, %s720_s0 }
  0x1f   :  { %137 = vrot.lane.b32.xlu1 %v771_v3, %s721_s26  ;;  %135 = vrot.lane.b32.xlu0 %v131_v4, %s721_s26 }
  0x23   :  { %133 = vrot.lane.b32.xlu0 %v765_v1, %s721_s26  ;;  %143 = vrot.lane.b32.xlu1 %v769_v2, %s721_s26 }
  0x27   :  { %141 = vrot.lane.b32.xlu0 %v132_v5, %s721_s26 }
  0x81   :  { %v74_v6 = vpop.permute.xlu1 %73  ;;  %v70_v7 = vpop.permute.xlu0 %69 }
  0x82   :  { %v79_v8 = vrot.slane %v74_v6, 4  ;;  %v77_v9 = vrot.slane %v70_v7, 4 }
  0x85   :  { %v76_v10 = vpop.permute.xlu1 %75  ;;  %v72_v11 = vpop.permute.xlu0 %71 }
  0x86   :  { %v80_v12 = vrot.slane %v76_v10, 4  ;;  %v93_v13 = vadd.f32 %v76_v10, %v769_v2  ;;  %v78_v14 = vrot.slane %v72_v11, 4  ;;  %v91_v15 = vadd.f32 %v72_v11, %v771_v3 }
  0x88   :  { %v84_v16 = vsel %vm55_vm0, %v79_v8, %v80_v12  ;;  %v81_v17 = vsel %vm55_vm0, %v77_v9, %v78_v14  ;;  %v105_v18 = vcombine.low %v91_v15, %v91_v15  ;;  %v107_v22 = vcombine.low %v93_v13, %v93_v13 }
  0x89   :  { %v83_v19 = vsel %vm82_vm1, %v70_v7, %v81_v17  ;;  %v796_v20 = vpop.permute.xlu1 %45  ;;  %v44_v21 = vpop.permute.xlu0 %43  ;;  %v85_v25 = vsel %vm82_vm1, %v74_v6, %v84_v16 }
  0x8a   :  { %112 = vrot.lane.b32.xlu1 %v105_v18, %s722_s27  ;;  %v90_v23 = vadd.f32 %v83_v19, %v765_v1  ;;  %v52_v24 = vrot.slane %v796_v20, 4  ;;  %v51_v26 = vrot.slane %v44_v21, 4  ;;  %v92_v30 = vadd.f32 %v85_v25, %v763_v0  ;;  %v156_v19 = vld [vmem:[%s891_s1] sm:$0xff] }
  0x8c   :  { %110 = vrot.lane.b32.xlu0 %v90_v23, %s722_s27  ;;  %v56_v27 = vsel %vm55_vm0, %v51_v26, %v52_v24  ;;  %v104_v34 = vcombine.low %v90_v23, %v90_v23  ;;  %v106_v40 = vcombine.low %v92_v30, %v92_v30 }
  0x8d   :  { %v802_v28 = vpop.permute.xlu1 %49  ;;  %v48_v29 = vpop.permute.xlu0 %47  ;;  %v58_v31 = vsel %vm57_vm2, %v44_v21, %v56_v27 }
  0x8e   :  { %118 = vrot.lane.b32.xlu1 %v107_v22, %s722_s27  ;;  %v54_v32 = vrot.slane %v802_v28, 4  ;;  %v53_v33 = vrot.slane %v48_v29, 4  ;;  %v65_v47 = vadd.f32 %v58_v31, %v765_v1  ;;  %v66_v1 = vadd.f32 %v796_v20, %v771_v3  ;;  %v500_v31 = vld [vmem:[%s894_s4] sm:$0x7] }
  0x8f   :  { %v68_v9 = vadd.f32 %v802_v28, %v769_v2  ;;  %v502_v28 = vlaneseq }
  0x90   :  { %116 = vrot.lane.b32.xlu0 %v92_v30, %s722_s27  ;;  %v59_v35 = vsel %vm55_vm0, %v53_v33, %v54_v32  ;;  %v96_v49 = vcombine.high %v65_v47, %v65_v47 }
  0x91   :  { %v60_v36 = vsel %vm57_vm2, %v48_v29, %v59_v35  ;;  %v136_v37 = vpop.permute.xlu0 %135  ;;  %v138_v39 = vpop.permute.xlu1 %137  ;;  %v503_v29 = vshrl.u32 %v502_v28, 7  ;;  %v566_v28 = vld [vmem:[%s892_s2] sm:$0xff] }
  0x92   :  { %108 = vrot.lane.b32.xlu1 %v104_v34, %s722_s27  ;;  %v147_v41 = vsel %vm145_vm3, %v136_v37, %v138_v39  ;;  %v67_v50 = vadd.f32 %v60_v36, %v763_v0 }
  0x93   :  { %v512_v30 = vsub.s32 2, %v503_v29  ;;  %v504_v32 = vsub.s32 0, %v503_v29  ;;  %v508_v33 = vsub.s32 1, %v503_v29 }
  0x94   :  { %139 = vrot.lane.b32.xlu0 %v763_v0, %s721_s26  ;;  %v97_v55 = vcombine.high %v67_v50, %v67_v50 }
  0x95   :  { %v134_v42 = vpop.permute.xlu0 %133  ;;  %v144_v45 = vpop.permute.xlu1 %143  ;;  %v513_v34 = vrot.slane %v500_v31, %v512_v30  ;;  %v505_v35 = vrot.slane %v500_v31, %v504_v32  ;;  %v509_v36 = vrot.slane %v500_v31, %v508_v33 }
  0x96   :  { %114 = vrot.lane.b32.xlu1 %v106_v40, %s722_s27  ;;  %v146_v43 = vsel %vm145_vm3, %v134_v42, %v136_v37 }
  0x98   :  { %168 = vrot.lane.b32.xlu0 %v147_v41, %s724_s28 }
  0x99   :  { %v142_v44 = vpop.permute.xlu0 %141 }
  0x9a   :  { %170 = vrot.lane.b32.xlu1 %v138_v39, %s724_s28  ;;  %v149_v46 = vsel %vm145_vm3, %v142_v44, %v144_v45 }
  0x9c   :  { %166 = vrot.lane.b32.xlu0 %v146_v43, %s724_s28 }
  0x9e   :  { %344 = vrot.lane.b32.xlu1 %v144_v45, %s724_s28 }
  0xa0   :  { %342 = vrot.lane.b32.xlu0 %v149_v46, %s724_s28 }
  0xfc   :  { %v113_v48 = vpop.permute.xlu1 %112 }
  0xfd   :  { %v152_v6 = vsel %vm55_vm0, %v66_v1, %v113_v48 }
  0xfe   :  { %v111_v51 = vpop.permute.xlu0 %110 }
  0xff   :  { %v122_v52 = vsel %vm120_vm4, %v111_v51, %v113_v48 }
 0x100   :  { %v119_v53 = vpop.permute.xlu1 %118  ;;  %v151_v54 = vsel %vm55_vm0, %v96_v49, %v122_v52 }
 0x101   :  { %162 = vrot.lane.b32.xlu1 %v151_v54, %s724_s28  ;;  %v155_v11 = vsel %vm55_vm0, %v68_v9, %v119_v53 }
 0x102   :  { %v117_v56 = vpop.permute.xlu0 %116 }
 0x103   :  { %v124_v57 = vsel %vm120_vm4, %v117_v56, %v119_v53 }
 0x104   :  { %v109_v58 = vpop.permute.xlu1 %108  ;;  %v154_v59 = vsel %vm55_vm0, %v97_v55, %v124_v57 }
 0x105   :  { %v121_v60 = vsel %vm120_vm4, %v109_v58, %v111_v51  ;;  %336 = vrot.lane.b32.xlu1 %v154_v59, %s724_s28 }
 0x106   :  { %v140_v61 = vpop.permute.xlu0 %139  ;;  %v150_v0 = vsel %vm55_vm0, %v65_v47, %v121_v60 }
 0x107   :  { %v148_v62 = vsel %vm145_vm3, %v140_v61, %v142_v44 }
 0x108   :  { %v115_v63 = vpop.permute.xlu1 %114  ;;  %340 = vrot.lane.b32.xlu0 %v148_v62, %s724_s28 }
 0x109   :  { %v123_v4 = vsel %vm120_vm4, %v115_v63, %v117_v56  ;;  %160 = vrot.lane.b32.xlu1 %v150_v0, %s724_s28 }
 0x10a   :  { %v169_v5 = vpop.permute.xlu0 %168  ;;  %v153_v7 = vsel %vm55_vm0, %v67_v50, %v123_v4 }
 0x10c   :  { %164 = vrot.lane.b32.xlu0 %v152_v6, %s724_s28  ;;  %v171_v8 = vpop.permute.xlu1 %170 }
 0x10d   :  { %334 = vrot.lane.b32.xlu1 %v153_v7, %s724_s28  ;;  %v176_v3 = vsel %vm172_vm6, %v169_v5, %v171_v8  ;;  %639 = vmatpush3.msk.msra.mxu1 %vm55_vm0, %v171_v8 }
 0x10e   :  { %v167_v10 = vpop.permute.xlu0 %166  ;;  %622 = vmatprep.subr.msk.mxu0 %vm55_vm0, %v176_v3  ;;  %640 = vmatprep.subr.mxu1 %v723_v38 }
 0x10f   :  { %v175_v12 = vsel %vm172_vm6, %v167_v10, %v169_v5 }
 0x110   :  { %338 = vrot.lane.b32.xlu0 %v155_v11, %s724_s28  ;;  %623 = vmatpush1.msk.msra.mxu0 %vm55_vm0, %v175_v12  ;;  %v345_v2 = vpop.permute.xlu1 %344 }
 0x112   :  { %v343_v14 = vpop.permute.xlu0 %342 }
 0x113   :  { %v349_v22 = vsel %vm172_vm6, %v343_v14, %v345_v2 }
 0x173   :  { %v163_v13 = vpop.permute.xlu1 %162 }
 0x177   :  { %v337_v15 = vpop.permute.xlu1 %336 }
 0x17a   :  { %v341_v16 = vpop.permute.xlu0 %340 }
 0x17b   :  { %v161_v17 = vpop.permute.xlu1 %160  ;;  %v348_v25 = vsel %vm172_vm6, %v341_v16, %v343_v14 }
 0x17c   :  { %v173_v21 = vsel %vm172_vm6, %v161_v17, %v163_v13 }
 0x17e   :  { %v165_v18 = vpop.permute.xlu0 %164 }
 0x17f   :  { %641 = vmatpush3.msra.mxu1 %v165_v18  ;;  %v174_v20 = vsel %vm172_vm6, %v163_v13, %v165_v18  ;;  %v335_v23 = vpop.permute.xlu1 %334 }
 0x180   :  { %220 = vmatprep.subr.mxu0 %v174_v20  ;;  %645 = vmatprep.subr.mxu1 %v723_v38  ;;  %v346_v27 = vsel %vm172_vm6, %v335_v23, %v337_v15 }
 0x181   :  { %221 = vmatpush1.msra.mxu0 %v173_v21  ;;  %643 = vmatmul.mubr.msk.f32.vlgmr.msra.gmra.mxu1 %vm180_vm7, %v156_v19  ;;  %v726_v21 = vmov 0  }
 0x182   :  { %646 = vmatpush3.msk.msra.mxu1 %vm55_vm0, %v345_v2  ;;  %624 = vmatmul.mubr.msk.f32.vlgmr.msra.gmra.mxu0 %vm180_vm7, %v156_v19  ;;  %v339_v24 = vpop.permute.xlu0 %338 }
 0x183   :  { %627 = vmatprep.subr.msk.mxu0 %vm55_vm0, %v349_v22  ;;  %647 = vmatprep.subr.mxu1 %v723_v38  ;;  %v347_v26 = vsel %vm172_vm6, %v337_v15, %v339_v24  ;;  %v581_v22 = vld [vmem:[%s893_s3] sm:$0xff]  ;;  %s727_s3 = smov [#allocation5]  }
 0x184   :  { %628 = vmatpush1.msk.msra.mxu0 %vm55_vm0, %v348_v25  ;;  %648 = vmatpush3.msra.mxu1 %v339_v24  ;;  %s610_s10 = sshll.u32 %s727_s3, 4  ;;  %s611_s10 = int_to_ptr.vmem [resolvable:$true] %s610_s10 }
 0x185   :  { %389 = vmatprep.subr.mxu0 %v347_v26  ;;  %423 = vmatprep.mubr.f32.mxu0 %v723_v38  ;;  %s692_s2 = scalar_lea.vmem %s611_s10, 768  ;;  %p697_p6 = scmp.lt.s32.totalorder %s611_s10, %s611_s10 }
 0x186   :  { %390 = vmatpush1.msra.mxu0 %v346_v27  ;;  %649 = vmatprep.mubr.msk.f32.mxu1 %vm725_vm5, %v723_v38  ;;  %p693_p5 = scmp.ne.s32.totalorder %s611_s10, %s692_s2  ;;  %p698_p7 = scmp.lt.s32.totalorder %s692_s2, %s692_s2 }
 0x187   :  { %629 = vmatmul.mubr.msk.f32.vlgmr.msra.gmra.mxu0 %vm180_vm7, %v156_v19  ;;  %650 = vmatmul.mubr.msk.f32.vlgmr.msra.gmra.mxu1 %vm180_vm7, %v156_v19 }
 0x188   :  { %666 = vset.pattern.permute.xlu1 %v726_v21  ;;  %667 = vset.pattern.permute.xlu0 %v726_v21  ;;  %p699_p8 = por %p698_p7, %p697_p6 }
 0x18a   :  { %p700_p9 = pnand %p699_p8, %p693_p5 }
 0x241   :  { %v327_v37 = vpop.f32.mrf.mxu1 }
 0x242   :  { %v256_v39 = vpop.f32.mrf.mxu0  ;;  %v519_v40 = vmul.f32 %v513_v34, %v327_v37 }
 0x243   :  { %v644_v38 = vpop.f32.mrf.mxu1  ;;  %v517_v42 = vmul.f32 %v505_v35, %v256_v39 }
 0x244   :  { %v258_v41 = vpop.f32.mrf.mxu0  ;;  %v525_v44 = vsel %vm524_vm8, %v519_v40, 0.0 }
 0x245   :  { %v518_v43 = vmul.f32 %v509_v36, %v258_v41 }
 0x247   :  { %v425_v45 = vpop.f32.mrf.mxu0  ;;  %v496_v46 = vpop.f32.mrf.mxu1  ;;  %v523_v47 = vadd.f32 %v518_v43, %v517_v42 }
 0x248   :  { %v522_v48 = vmul.f32 %v513_v34, %v496_v46  ;;  %v520_v52 = vmul.f32 %v505_v35, %v425_v45 }
 0x249   :  { %v427_v49 = vpop.f32.mrf.mxu0  ;;  %v651_v50 = vpop.f32.mrf.mxu1  ;;  %v526_v51 = vadd.f32 %v525_v44, %v523_v47 }
 0x24a   :  { %v521_v53 = vmul.f32 %v509_v36, %v427_v49  ;;  %v530_v54 = vsel %vm524_vm8, %v522_v48, 0.0 }
 0x24b   :  { %527 = vadd.xlane.f32.xlu0 %v526_v51 }
 0x24c   :  { %v529_v55 = vadd.f32 %v521_v53, %v520_v52 }
 0x24e   :  { %v531_v56 = vadd.f32 %v530_v54, %v529_v55 }
 0x250   :  { %532 = vadd.xlane.f32.xlu1 %v531_v56 }
 0x2d4   :  { %v528_v57 = vpop.xlane.xlu0 %527 }
 0x2d9   :  { %v533_v58 = vpop.xlane.xlu1 %532 }
 0x2da   :  { %v534_v59 = vadd.f32 %v533_v58, %v528_v57 }
 0x2dc   :  { %v535_v60 = vmul.f32 0.001953125, %v534_v59 }
 0x2de   :  { %v536_v61 = vsub.f32 %v256_v39, %v535_v60  ;;  %v537_v62 = vsub.f32 %v258_v41, %v535_v60  ;;  %v538_v63 = vsub.f32 %v327_v37, %v535_v60  ;;  %v539_v0 = vsub.f32 %v425_v45, %v535_v60 }
 0x2df   :  { %v540_v1 = vsub.f32 %v427_v49, %v535_v60  ;;  %v541_v4 = vsub.f32 %v496_v46, %v535_v60 }
 0x2e0   :  { %v542_v5 = vmul.f32 %v536_v61, %v505_v35  ;;  %v543_v6 = vmul.f32 %v537_v62, %v509_v36  ;;  %v544_v7 = vmul.f32 %v538_v63, %v513_v34  ;;  %v545_v8 = vmul.f32 %v539_v0, %v505_v35 }
 0x2e1   :  { %v546_v9 = vmul.f32 %v540_v1, %v509_v36  ;;  %v547_v3 = vmul.f32 %v541_v4, %v513_v34 }
 0x2e2   :  { %v548_v10 = vmul.f32 %v542_v5, %v542_v5  ;;  %v549_v11 = vmul.f32 %v543_v6, %v543_v6  ;;  %v550_v12 = vmul.f32 %v544_v7, %v544_v7  ;;  %v551_v2 = vmul.f32 %v545_v8, %v545_v8 }
 0x2e3   :  { %v552_v13 = vmul.f32 %v546_v9, %v546_v9  ;;  %v553_v14 = vmul.f32 %v547_v3, %v547_v3 }
 0x2e4   :  { %v554_v15 = vadd.f32 %v549_v11, %v548_v10  ;;  %v555_v16 = vsel %vm524_vm8, %v550_v12, 0.0 }
 0x2e5   :  { %v559_v18 = vadd.f32 %v552_v13, %v551_v2  ;;  %v560_v19 = vsel %vm524_vm8, %v553_v14, 0.0 }
 0x2e6   :  { %v556_v17 = vadd.f32 %v555_v16, %v554_v15 }
 0x2e7   :  { %v561_v20 = vadd.f32 %v560_v19, %v559_v18 }
 0x2e8   :  { %557 = vadd.xlane.f32.xlu0 %v556_v17 }
 0x2ec   :  { %562 = vadd.xlane.f32.xlu0 %v561_v20 }
 0x302   :  { %584 = vperm.xlu0 %667, %v581_v22  }
 0x371   :  { %v558_v23 = vpop.xlane.xlu0 %557 }
 0x375   :  { %v563_v24 = vpop.xlane.xlu0 %562 }
 0x376   :  { %v564_v25 = vadd.f32 %v563_v24, %v558_v23 }
 0x378   :  { %v565_v26 = vmul.f32 0.001953125, %v564_v25 }
 0x37a   :  { %v567_v27 = vadd.f32 1e-05, %v565_v26 }
 0x37c   :  { %670 = vrsqrt.f32 %v567_v27 }
 0x37d   :  { %v585_v32 = vpop.permute.xlu0 %584 }
 0x389   :  { %v671_v29 = vpop.eup %670 }
 0x38a   :  { %v569_v30 = vmul.f32 %v671_v29, %v566_v28 }
 0x38c   :  { %572 = vperm.xlu1 %666, %v569_v30  }
 0x407   :  { %v573_v31 = vpop.permute.xlu1 %572 }
 0x408   :  { %v575_v33 = vmul.f32 %v573_v31, %v536_v61  ;;  %v576_v34 = vmul.f32 %v573_v31, %v537_v62  ;;  %v577_v35 = vmul.f32 %v573_v31, %v538_v63  ;;  %v578_v36 = vmul.f32 %v573_v31, %v539_v0 }
 0x409   :  { %v579_v37 = vmul.f32 %v573_v31, %v540_v1  ;;  %v580_v39 = vmul.f32 %v573_v31, %v541_v4 }
 0x40a   :  { %v587_v40 = vadd.f32 %v585_v32, %v575_v33  ;;  %v588_v38 = vadd.f32 %v585_v32, %v576_v34  ;;  %v589_v41 = vadd.f32 %v585_v32, %v577_v35  ;;  %v590_v42 = vadd.f32 %v585_v32, %v578_v36 }
 0x40b   :  { %v591_v43 = vadd.f32 %v585_v32, %v579_v37  ;;  %v592_v44 = vadd.f32 %v585_v32, %v580_v39 }
 0x40c   :  { %v593_v45 = vmax.f32 %v587_v40, 0.0  ;;  %v594_v46 = vmax.f32 %v588_v38, 0.0  ;;  %v595_v47 = vmax.f32 %v589_v41, 0.0  ;;  %v596_v48 = vmax.f32 %v590_v42, 0.0 }
 0x40d   :  { %v597_v49 = vmax.f32 %v591_v43, 0.0  ;;  %v598_v50 = vmax.f32 %v592_v44, 0.0 }
 0x40e   :  { %599 = vst [vmem:[#allocation5] sm:$0xff] %v593_v45  ;;  %600 = vst [vmem:[#allocation5 + $0x8] sm:$0xff] %v594_v46 }
 0x40f   :  { %601 = vst.msk [vmem:[#allocation5 + $0x10] sm:$0xff] %vm524_vm8, %v595_v47  ;;  %602 = vst [vmem:[#allocation5 + $0x18] sm:$0xff] %v596_v48 }
 0x410   :  { %603 = vst [vmem:[#allocation5 + $0x20] sm:$0xff] %v597_v49  ;;  %604 = vst.msk [vmem:[#allocation5 + $0x28] sm:$0xff] %vm524_vm8, %v598_v50 }
 0x411   :  { %703 = shalt.err (!%p700_p9)
}
 0x412   :  { %s728_s11 = smov 384   ;;  %s729_s12 = smov 24  }
 0x413   :  { %616 = dma.vmem_to_hbm [thread:$0]  %s611_s10, 768, %s895_s5, [#allocation4], %s728_s11, %s728_s11, %s729_s12  }
 0x414   :  { %714 = dma.done.wait [#allocation4], 768  }
 0x415   :  { %715 = vsyncadd [#allocation4], 4294966528 }
 0x416   :  { %620 = vsyncpa [#allocation3], 1 }
 0x417   :  { %621 = vsyncpa [#allocation4], 1 }

</bundles_post_ra>
